<compile_context>
chip_gen: v7x
topology: tpu7x:2x2x1
jax: 0.10.0
libtpu: 0.0.40
codegen_flags: <defaults>
</compile_context>

<pallas_src>
import functools
import math

import jax
import jax.numpy as jnp
from jax.experimental import pallas as pl
from jax.experimental.pallas import tpu as pltpu


def _mse_multimode_kernel(pred_ref, label_ref, out_ref, *, valid_rows, masked):
    """pred_ref: (TB, M, TD) native dtype, label_ref: (TB, TD), out_ref: (1,1) SMEM f32.

    Writes the *unscaled* per-tile sum of (min over modes of the squared-error
    sum); the /12 of the reference is applied once on the final scalar.
    """
    tb = pred_ref.shape[0]
    pred = pred_ref[...].astype(jnp.float32)           # upcast in-kernel, f32 accumulation
    label = label_ref[...].astype(jnp.float32)
    diff = pred - label[:, None, :]                    # broadcast over modes in-kernel
    se_sum = jnp.sum(diff * diff, axis=2)              # (TB, M) raw SSE per (row, mode)
    min_se = jnp.min(se_sum, axis=1, keepdims=True)    # (TB, 1) == argmin-gather of ref
    if masked:
        # Mask rows past the true batch size (padded tail block may hold garbage).
        i = pl.program_id(0)
        row = jax.lax.broadcasted_iota(jnp.int32, (tb, 1), 0) + i * tb
        min_se = jnp.where(row < valid_rows, min_se, jnp.zeros_like(min_se))
    out_ref[0, 0] = jnp.sum(min_se)


def _mse_samedim_kernel(pred_ref, label_ref, out_ref, *, valid_rows, masked):
    """pred_ref/label_ref: (TB, C) native dtype, out_ref: (1,1) SMEM f32.

    Writes the unscaled per-tile sum of squared errors; the /prod(shape[1:])
    (mean-then-sum == total / denominator) is applied once on the final scalar.
    """
    tb = pred_ref.shape[0]
    diff = pred_ref[...].astype(jnp.float32) - label_ref[...].astype(jnp.float32)
    se = diff * diff
    if masked:
        i = pl.program_id(0)
        row = jax.lax.broadcasted_iota(jnp.int32, (tb, 1), 0) + i * tb
        se = jnp.where(row < valid_rows, se, jnp.zeros_like(se))
    out_ref[0, 0] = jnp.sum(se)


def mse_loss(pred, label, *, block_rows=256):
    """JAX/Pallas port of cross_view_transformer.losses.MSE (forward semantics)."""
    pred = jnp.asarray(pred)    # keep native dtype (bf16 stays bf16); no HBM f32 copy
    label = jnp.asarray(label)

    smem_scalar = pl.BlockSpec((1, 1), lambda i: (i, 0),
                               memory_space=pltpu.MemorySpace.SMEM)
    cparams = pltpu.CompilerParams(dimension_semantics=("parallel",))

    if pred.ndim == label.ndim + 1:
        # ---- multi-mode path ----
        B, M = pred.shape[0], pred.shape[1]
        td = math.prod(pred.shape[2:])
        pred2 = pred.reshape(B, M, td)       # contiguous -> free reshape
        label2 = label.reshape(B, td)        # broadcast over M happens inside the kernel
        tb = B if B <= block_rows else block_rows
        nb = pl.cdiv(B, tb)
        masked = (nb * tb) != B              # only emit tail masking when needed
        partial = pl.pallas_call(
            functools.partial(_mse_multimode_kernel, valid_rows=B, masked=masked),
            out_shape=jax.ShapeDtypeStruct((nb, 1), jnp.float32),
            grid=(nb,),
            in_specs=[
                pl.BlockSpec((tb, M, td), lambda i: (i, 0, 0)),
                pl.BlockSpec((tb, td), lambda i: (i, 0)),
            ],
            out_specs=smem_scalar,
            compiler_params=cparams,
        )(pred2, label2)
        # Hard-coded /12 (NOT /td) is intentional: matches the PyTorch reference.
        return jnp.sum(partial) * (1.0 / 12.0)
    else:
        # ---- same-dim path: loss == sum(SE) / prod(shape[1:]) ----
        B = pred.shape[0]
        denom = math.prod(pred.shape[1:])
        n = B * denom
        if n % 128 == 0:
            rows, cols = n // 128, 128       # lane-dense repack (free contiguous reshape)
        else:
            rows, cols = B, denom
        pred2 = pred.reshape(rows, cols)
        label2 = label.reshape(rows, cols)
        tb = rows if rows <= block_rows else block_rows
        nb = pl.cdiv(rows, tb)
        masked = (nb * tb) != rows
        partial = pl.pallas_call(
            functools.partial(_mse_samedim_kernel, valid_rows=rows, masked=masked),
            out_shape=jax.ShapeDtypeStruct((nb, 1), jnp.float32),
            grid=(nb,),
            in_specs=[
                pl.BlockSpec((tb, cols), lambda i: (i, 0)),
                pl.BlockSpec((tb, cols), lambda i: (i, 0)),
            ],
            out_specs=smem_scalar,
            compiler_params=cparams,
        )(pred2, label2)
        return jnp.sum(partial) / float(denom)


class MSELoss:
    """Pallas/JAX port of cross_view_transformer.losses.MSELoss."""

    def __init__(self, modes: int, weight: float = 1.0):
        self.loss_fn = mse_loss
        self.modes = modes
        self.weight = weight  # stored but (as in the reference forward) unused

    def __call__(self, pred, batch):
        label = batch['label_waypoint']
        if isinstance(pred, tuple):
            pred = pred[0]
        return self.loss_fn(pred, label)


if __name__ == "__main__":
    key = jax.random.PRNGKey(0)
    B, M, T, D = 2, 4, 8, 2  # batch=2, modes=4, 8 waypoints of dim 2
    k1, k2, k3, k4, k5, k6 = jax.random.split(key, 6)

    loss_mod = MSELoss(modes=M)

    # --- multi-mode branch (pred passed as a tuple), small batch, f32 ---
    pred_multi = jax.random.normal(k1, (B, M, T, D), jnp.float32)
    label = jax.random.normal(k2, (B, T, D), jnp.float32)
    out_multi = jax.block_until_ready(loss_mod((pred_multi,), {'label_waypoint': label}))
    mse_ref = jnp.sum((pred_multi - label[:, None]) ** 2, axis=(2, 3)) / 12.0
    ref_multi = jnp.sum(mse_ref[jnp.arange(B), jnp.argmin(mse_ref, axis=1)])
    assert jnp.allclose(out_multi, ref_multi, atol=1e-5, rtol=1e-5), (out_multi, ref_multi)

    # --- multi-mode branch, bf16 inputs (native-dtype path, f32 accumulation) ---
    pm16 = pred_multi.astype(jnp.bfloat16)
    lb16 = label.astype(jnp.bfloat16)
    out_bf16 = jax.block_until_ready(loss_mod((pm16,), {'label_waypoint': lb16}))
    mse16 = jnp.sum((pm16.astype(jnp.float32)
                     - lb16.astype(jnp.float32)[:, None]) ** 2, axis=(2, 3)) / 12.0
    ref_bf16 = jnp.sum(jnp.min(mse16, axis=1))
    assert jnp.allclose(out_bf16, ref_bf16, atol=1e-5, rtol=1e-5), (out_bf16, ref_bf16)

    # --- multi-mode branch, large batch exercising the B-tiled grid + tail masking ---
    B2 = 300
    pred_big = jax.random.normal(k3, (B2, M, T, D), jnp.float32)
    label_big = jax.random.normal(k4, (B2, T, D), jnp.float32)
    out_big = jax.block_until_ready(mse_loss(pred_big, label_big))
    mse_big = jnp.sum((pred_big - label_big[:, None]) ** 2, axis=(2, 3)) / 12.0
    ref_big = jnp.sum(jnp.min(mse_big, axis=1))
    assert jnp.allclose(out_big, ref_big, atol=1e-4, rtol=1e-5), (out_big, ref_big)

    # --- multi-mode branch, exact tiling (mask elided at trace time) ---
    B4 = 512
    pred_ex = jax.random.normal(k5, (B4, M, T, D), jnp.float32)
    label_ex = jax.random.normal(k6, (B4, T, D), jnp.float32)
    out_ex = jax.block_until_ready(mse_loss(pred_ex, label_ex))
    mse_ex = jnp.sum((pred_ex - label_ex[:, None]) ** 2, axis=(2, 3)) / 12.0
    ref_ex = jnp.sum(jnp.min(mse_ex, axis=1))
    assert jnp.allclose(out_ex, ref_ex, atol=1e-4, rtol=1e-5), (out_ex, ref_ex)

    # --- same-dim branch, tiny (no 128-lane fold possible) ---
    pred_same = jax.random.normal(k5, (B, T, D), jnp.float32)
    out_same = jax.block_until_ready(loss_mod(pred_same, {'label_waypoint': label}))
    ref_same = jnp.sum(jnp.mean((pred_same - label) ** 2, axis=(1, 2)))
    assert jnp.allclose(out_same, ref_same, atol=1e-5, rtol=1e-5), (out_same, ref_same)

    # --- same-dim branch, size that folds to lane-dense (rows, 128) tiles ---
    B3 = 64
    pred_s2 = jax.random.normal(k6, (B3, T, D), jnp.float32)
    label_s2 = jax.random.normal(k1, (B3, T, D), jnp.float32)
    out_s2 = jax.block_until_ready(mse_loss(pred_s2, label_s2))
    ref_s2 = jnp.sum(jnp.mean((pred_s2 - label_s2) ** 2, axis=(1, 2)))
    assert jnp.allclose(out_s2, ref_s2, atol=1e-5, rtol=1e-5), (out_s2, ref_s2)

    print("KERNEL_OK")
</pallas_src>

<mosaic_0001>
module attributes {stable_mosaic.version = 11 : i64} {
  func.func @_mse_multimode_kernel(%arg0: i32, %arg1: memref<2x4x16xf32, #tpu.memory_space<vmem>>, %arg2: memref<2x16xf32, #tpu.memory_space<vmem>>, %arg3: memref<1x1xf32, #tpu.memory_space<smem>>) attributes {dimension_semantics = [#tpu.dimension_semantics<parallel>], iteration_bounds = array<i64: 1>, scalar_prefetch = 0 : i64, scratch_operands = 0 : i64, tpu.core_type = #tpu.core_type<tc>, window_params = [{transform_indices = @transform_0, window_bounds = array<i64: 2, 4, 16>}, {transform_indices = @transform_1, window_bounds = array<i64: 2, 16>}, {transform_indices = @transform_2, window_bounds = array<i64: 1, 1>}]} {
    %c0 = arith.constant 0 : index
    %c0_0 = arith.constant 0 : index
    %c0_1 = arith.constant 0 : index
    %0 = vector.load %arg1[%c0, %c0_0, %c0_1] : memref<2x4x16xf32, #tpu.memory_space<vmem>>, vector<2x4x16xf32>
    %c0_2 = arith.constant 0 : index
    %c0_3 = arith.constant 0 : index
    %1 = vector.load %arg2[%c0_2, %c0_3] : memref<2x16xf32, #tpu.memory_space<vmem>>, vector<2x16xf32>
    %2 = vector.shape_cast %1 : vector<2x16xf32> to vector<2x1x16xf32>
    %3 = vector.broadcast %2 : vector<2x1x16xf32> to vector<2x4x16xf32>
    %4 = arith.subf %0, %3 : vector<2x4x16xf32>
    %5 = arith.mulf %4, %4 : vector<2x4x16xf32>
    %cst = arith.constant dense<0.000000e+00> : vector<2x4xf32>
    %6 = vector.multi_reduction <add>, %5, %cst [2] : vector<2x4x16xf32> to vector<2x4xf32>
    %cst_4 = arith.constant dense<0x7F800000> : vector<2xf32>
    %7 = vector.multi_reduction <minimumf>, %6, %cst_4 [1] : vector<2x4xf32> to vector<2xf32>
    %8 = vector.shape_cast %7 : vector<2xf32> to vector<2x1xf32>
    %9 = vector.shape_cast %8 : vector<2x1xf32> to vector<1x2x1xf32>
    %cst_5 = arith.constant dense<0.000000e+00> : vector<1xf32>
    %10 = vector.multi_reduction <add>, %9, %cst_5 [1, 2] : vector<1x2x1xf32> to vector<1xf32>
    %11 = vector.shape_cast %10 : vector<1xf32> to vector<1x1x1xf32>
    %12 = vector.extract %11[0, 0, 0] : f32 from vector<1x1x1xf32>
    %c0_6 = arith.constant 0 : index
    %c0_7 = arith.constant 0 : index
    %13 = memref.load %arg3[%c0_6, %c0_7] : memref<1x1xf32, #tpu.memory_space<smem>>
    memref.store %12, %arg3[%c0_6, %c0_7] : memref<1x1xf32, #tpu.memory_space<smem>>
    return
  }
  func.func @transform_0(%arg0: i32) -> (i32, i32, i32) {
    %c0_i32 = arith.constant 0 : i32
    %c0_i32_0 = arith.constant 0 : i32
    %c0_i32_1 = arith.constant 0 : i32
    return %arg0, %c0_i32, %c0_i32_0 : i32, i32, i32
  }
  func.func @transform_1(%arg0: i32) -> (i32, i32) {
    %c0_i32 = arith.constant 0 : i32
    %c0_i32_0 = arith.constant 0 : i32
    return %arg0, %c0_i32 : i32, i32
  }
  func.func @transform_2(%arg0: i32) -> (i32, i32) {
    %c0_i32 = arith.constant 0 : i32
    %c0_i32_0 = arith.constant 0 : i32
    return %arg0, %c0_i32 : i32, i32
  }
}

</mosaic_0001>

<bundles_post_ra>
// kernel: tpu_custom_call.1
= control target key start
LH: loop header
LB: loop body
LE: loop exit
PB: predicated region body
PF: predicated region fallthrough
CT: control target
= control target key end

     0   :  { %7 = vsyncpa [#allocation3], 0  ;;  %s210_s0 = inlined_call_operand.hbm [shape: f32[2,4,16], index: 0, kind: input, shape index: {}]   ;;  %s211_s1 = inlined_call_operand.vmem [shape: f32[2,16], index: 1, kind: input, shape index: {}]   ;;  %s212_s2 = inlined_call_operand.hbm [shape: f32[1,1], index: 2, kind: output, shape index: {}]  }
   0x1   :  { %8 = vsyncpa [#allocation4], 0  ;;  %s163_s9 = smov [#allocation2]   ;;  %s127_s13 = scalar_lea.hbm %s210_s0, 128 }
   0x2   :  { %s14_s10 = sshll.u32 %s163_s9, 4  ;;  %p128_p0 = scmp.ne.s32.totalorder %s210_s0, %s127_s13  ;;  %s15_s10 = int_to_ptr.vmem [resolvable:$true] %s14_s10 }
   0x3   :  { %p131_p1 = scmp.lt.u32.totalorder %s127_s13, %s210_s0 }
   0x5   :  { %p133_p2 = pnand %p131_p1, %p128_p0 }
   0x7   :  { %136 = shalt.err (!%p133_p2)
}
   0x8   :  { %s137_s18 = scalar_lea.vmem %s15_s10, 128  ;;  %p142_p4 = scmp.lt.s32.totalorder %s15_s10, %s15_s10 }
   0x9   :  { %p138_p3 = scmp.ne.s32.totalorder %s15_s10, %s137_s18  ;;  %p143_p5 = scmp.lt.s32.totalorder %s137_s18, %s137_s18 }
   0xb   :  { %p144_p6 = por %p143_p5, %p142_p4 }
   0xd   :  { %p145_p7 = pnand %p144_p6, %p138_p3 }
   0xf   :  { %148 = shalt.err (!%p145_p7)
}
  0x10   :  { %s164_s19 = smov 64   ;;  %s165_s20 = smov 4  }
  0x11   :  { %20 = dma.hbm_to_vmem [thread:$0]  %s210_s0, 128, %s15_s10, [#allocation3], %s164_s19, %s164_s19, %s165_s20  }
  0x12   :  { %159 = dma.done.wait [#allocation3], 128  }
  0x13   :  { %160 = vsyncadd [#allocation3], 4294967168  ;;  %v41_v0 = vlaneseq  ;;  %v166_v1 = vmov 1966171168   ;;  %v26_v12 = vld [vmem:[#allocation2] sm:$0xf] }
  0x14   :  { %v39_v2 = vunpack.c.l.s4 %v166_v1  ;;  %v119_v9 = vld.sshfl [vmem:[%s211_s1] sm:$0x11 pattern:$0x75316420]  ;;  %v27_v15 = vld [vmem:[#allocation2 + $0x4] sm:$0xf] }
  0x15   :  { %v42_v3 = vshrl.u32 %v41_v0, 7  ;;  %v76_v4 = vand.u32 127, %v41_v0  ;;  %v37_v10 = vcombine.high %v119_v9, %v119_v9  ;;  %vm66_vm0 = vcmask 125952   ;;  %s149_s26 = scalar_lea.hbm %s212_s2, 16 }
  0x16   :  { %v40_v5 = vunpack.c.0.s8 %v39_v2  ;;  %vm85_vm1 = vcmask 1041409   ;;  %vm88_vm2 = vcmask 25600   ;;  %vm92_vm3 = vcmask 1024   ;;  %p150_p8 = scmp.ne.s32.totalorder %s212_s2, %s149_s26  ;;  %p153_p9 = scmp.lt.u32.totalorder %s149_s26, %s212_s2 }
  0x17   :  { %v79_v6 = vsub.s32 %v76_v4, %v42_v3  ;;  %v54_v8 = vsub.s32 0, %v42_v3 }
  0x18   :  { %v43_v7 = vsub.s32 %v40_v5, %v42_v3  ;;  %p155_p10 = pnand %p153_p9, %p150_p8 }
  0x1a   :  { %v44_v11 = vrot.slane %v119_v9, %v43_v7  ;;  %v51_v14 = vrot.slane %v37_v10, %v43_v7 }
  0x1c   :  { %v55_v13 = vrot.slane %v44_v11, %v54_v8  ;;  %v59_v17 = vrot.slane %v51_v14, %v54_v8 }
  0x1e   :  { %v62_v16 = vsub.f32 %v26_v12, %v55_v13  ;;  %v63_v19 = vsub.f32 %v27_v15, %v59_v17 }
  0x20   :  { %v64_v18 = vmul.f32 %v62_v16, %v62_v16  ;;  %v65_v21 = vmul.f32 %v63_v19, %v63_v19 }
  0x22   :  { %v67_v20 = vsel %vm66_vm0, %v64_v18, 0.0  ;;  %v70_v22 = vsel %vm66_vm0, %v65_v21, 0.0 }
  0x23   :  { %68 = vadd.xlane.f32.xlu0 %v67_v20 }
  0x27   :  { %71 = vadd.xlane.f32.xlu0 %v70_v22 }
  0xb0   :  { %v69_v23 = vpop.xlane.xlu0 %68 }
  0xb1   :  { %v80_v25 = vrot.slane %v69_v23, %v79_v6 }
  0xb4   :  { %v72_v24 = vpop.xlane.xlu0 %71 }
  0xb5   :  { %v84_v26 = vrot.slane %v72_v24, %v79_v6 }
  0xb7   :  { %v86_v27 = vsel %vm85_vm1, %v84_v26, %v80_v25 }
  0xb8   :  { %v89_v28 = vsel %vm88_vm2, %v86_v27, inf }
  0xb9   :  { %90 = vmin.xlane.f32.xlu1 %v89_v28 }
 0x146   :  { %v91_v29 = vpop.xlane.xlu1 %90 }
 0x147   :  { %v93_v30 = vsel %vm92_vm3, %v91_v29, 0.0 }
 0x148   :  { %94 = vadd.xlane.f32.xlu1 %v93_v30 }
 0x1d5   :  { %v95_v31 = vpop.xlane.xlu1 %94 }
 0x1d6   :  { %v96_v32 = vrot.slane %v95_v31, 4 }
 0x1d8   :  { %v97_v33 = vadd.f32 %v96_v32, %v95_v31 }
 0x1da   :  { %v98_v34 = vrot.slane %v97_v33, 2 }
 0x1dc   :  { %v99_v35 = vadd.f32 %v98_v34, %v97_v33 }
 0x1de   :  { %v100_v36 = vrot.slane %v99_v35, 1 }
 0x1e0   :  { %v101_v37 = vadd.f32 %v100_v36, %v99_v35 }
 0x1e2   :  { %120 = vpush %v101_v37 }
 0x213   :  { %s121_s0 = spop %120 }
 0x214   :  { %104 = sst [smem:[#allocation5]] %s121_s0 }
 0x215   :  { %158 = shalt.err (!%p155_p10)
}
 0x216   :  { %s167_s3 = smov [#allocation5]  }
 0x217   :  { %112 = dma.smem_to_hbm %s167_s3, 16, %s212_s2, [#allocation4]  }
 0x218   :  { %161 = dma.done.wait [#allocation4], 16  }
 0x219   :  { %162 = vsyncadd [#allocation4], 4294967280 }
 0x21a   :  { %116 = sfence }
 0x21b   :  { %117 = vsyncpa [#allocation3], 1 }
 0x21c   :  { %118 = vsyncpa [#allocation4], 1 }

</bundles_post_ra>
